<compile_context>
chip_gen: v7x
topology: tpu7x:2x2x1
jax: 0.10.0
libtpu: 0.0.40
codegen_flags: <defaults>
</compile_context>

<pallas_src>
import functools

import jax
import jax.numpy as jnp
from jax.experimental import pallas as pl
from jax.experimental.pallas import tpu as pltpu


def _round_up(x: int, m: int) -> int:
    return ((x + m - 1) // m) * m


# ----------------------------------------------------------------------------
# Pallas kernels
# ----------------------------------------------------------------------------
def _adj_body(x, xr, o_ref, center: bool, eps: float):
    """Cosine / Pearson adjacency body.

    x  : (F, N)   node features as columns (N lane-dense)
    xr : (F, TR)  column slice for this row tile (or None -> same as x)
    o  : (TR, N)
    """
    x = x.astype(jnp.float32)
    if center:
        x = x - jnp.mean(x, axis=0, keepdims=True)
    xh = x * jax.lax.rsqrt(jnp.sum(x * x, axis=0, keepdims=True) + eps)

    if xr is None:
        xhr = xh
    else:
        xr = xr.astype(jnp.float32)
        if center:
            xr = xr - jnp.mean(xr, axis=0, keepdims=True)
        xhr = xr * jax.lax.rsqrt(jnp.sum(xr * xr, axis=0, keepdims=True) + eps)

    # native X^T X contraction (contract feature axis 0 of both operands)
    adj = jax.lax.dot_general(xhr, xh, (((0,), (0,)), ((), ())),
                              preferred_element_type=jnp.float32)    # (TR, N)
    o_ref[0] = adj.astype(o_ref.dtype)


def _adj_kernel_full(x_ref, o_ref, *, center: bool, eps: float = 1e-8):
    _adj_body(x_ref[0], None, o_ref, center, eps)


def _adj_kernel_tiled(x_ref, xr_ref, o_ref, *, center: bool, eps: float = 1e-8):
    _adj_body(x_ref[0], xr_ref[0], o_ref, center, eps)


def _fused_temporal_kernel(xc_ref, xp_ref, wc_ref, cb_ref, wfc_ref,
                           wp_ref, bf_ref, o_ref, *, b_tile: int, mxu_dtype):
    """Fused temporal path (closeness branch enabled), batch-tiled.

      xc_ref : (b_tile, 2L,  Np)   flattened x_c (mean folded into Wc')
      xp_ref : (b_tile, 2PL, Np)   flattened x_p (mean folded into W_period)
      wc_ref : (L, 2L)   bf16      Wc'  (close placeholder, mean-folded)
      cb_ref : (L, 1)    f32
      wfc_ref: (L, L)    bf16      tf_w[:, L:]  (Fusion half acting on sq_c)
      wp_ref : (L, 2PL)  bf16      tfwp @ Wp'   (Fusion-composed period weight)
      bf_ref : (L, 1)    f32       tfwp @ p_b + tf_b
      o_ref  : (b_tile, L, Np)     x_temporal^T  (already final layout)
    """
    wc = wc_ref[...]
    wfc = wfc_ref[...]
    wp = wp_ref[...]
    cb = cb_ref[...]
    bf = bf_ref[...]
    for b in range(b_tile):
        xp = xp_ref[b].astype(mxu_dtype)                         # (2PL, Np)
        xc = xc_ref[b].astype(mxu_dtype)                         # (2L,  Np)
        acc = jnp.dot(wp, xp, preferred_element_type=jnp.float32)
        h = jax.nn.sigmoid(
            jnp.dot(wc, xc, preferred_element_type=jnp.float32) + cb)
        acc = acc + jnp.dot(wfc, h.astype(mxu_dtype),
                            preferred_element_type=jnp.float32)
        o_ref[b] = (acc + bf).astype(o_ref.dtype)


def _period_only_kernel(xp_ref, wp_ref, bf_ref, o_ref, *, b_tile: int, mxu_dtype):
    """Temporal path with c=False: Fusion(x2=None) is the identity, so the
    output is just the (mean-folded) period linear."""
    wp = wp_ref[...]
    bf = bf_ref[...]
    for b in range(b_tile):
        xp = xp_ref[b].astype(mxu_dtype)
        o_ref[b] = (jnp.dot(wp, xp, preferred_element_type=jnp.float32) + bf
                    ).astype(o_ref.dtype)


# ----------------------------------------------------------------------------
# Pallas-call wrappers
# ----------------------------------------------------------------------------
def compute_adj(feats: jax.Array, *, center: bool, row_tile=None) -> jax.Array:
    """feats: (bs, F, N) node features as COLUMNS -> adjacency (bs, N, N)."""
    bs, F, N = feats.shape

    if row_tile is None:
        # Row-tile the N^2 output once it would stress VMEM (v7x: 64 MiB).
        if N * N * 4 * 2 > (8 << 20) and N % 512 == 0:
            row_tile = 512
        else:
            row_tile = N
    n_rt = N // row_tile

    if row_tile == N:
        return pl.pallas_call(
            functools.partial(_adj_kernel_full, center=center),
            out_shape=jax.ShapeDtypeStruct((bs, N, N), jnp.float32),
            grid=(bs,),
            in_specs=[pl.BlockSpec((1, F, N), lambda b: (b, 0, 0))],
            out_specs=pl.BlockSpec((1, N, N), lambda b: (b, 0, 0)),
            compiler_params=pltpu.CompilerParams(
                dimension_semantics=("parallel",)),
        )(feats)

    return pl.pallas_call(
        functools.partial(_adj_kernel_tiled, center=center),
        out_shape=jax.ShapeDtypeStruct((bs, N, N), jnp.float32),
        grid=(bs, n_rt),
        in_specs=[
            pl.BlockSpec((1, F, N), lambda b, r: (b, 0, 0)),
            pl.BlockSpec((1, F, row_tile), lambda b, r: (b, 0, r)),
        ],
        out_specs=pl.BlockSpec((1, row_tile, N), lambda b, r: (b, r, 0)),
        compiler_params=pltpu.CompilerParams(
            dimension_semantics=("parallel", "parallel")),
    )(feats, feats)


def fused_temporal(x_c: jax.Array, x_p: jax.Array, params, *,
                   use_c: bool, mxu_dtype=jnp.bfloat16, b_tile=None) -> jax.Array:
    """Fused close/period/temporal-Fusion path.

    x_c: (bs, L, 2, N), x_p: (bs, P, L, 2, N) -> (bs, L, N)
    (already the transposed layout the module returns).
    """
    bs, L, F2, N = x_c.shape
    _, P, _, _, _ = x_p.shape
    Kc = L * F2
    Kp = P * L * F2

    # ---- host-side weight pre-expansion (mean folding) + Fusion composition
    c_w, c_b = params["c_w"], params["c_b"]
    p_w, p_b = params["p_w"], params["p_b"]
    tf_w, tf_b = params["tf_w"], params["tf_b"]

    # Wc'[i, l*F2 + f] = c_w[i, l] / F2  : folds mean over flow into the dot
    wc_exp = jnp.repeat(c_w, F2, axis=1) / float(F2)                 # (L, 2L)
    # Wp'[i, p*(F2*L) + l*F2 + f] = p_w[i, l] / (F2*P)
    wp_exp = jnp.tile(jnp.repeat(p_w, F2, axis=1), (1, P)) / float(F2 * P)  # (L, 2PL)

    if use_c:
        tfwp = tf_w[:, :L]            # Fusion concat order is [sq_p, sq_c]
        tfwc = tf_w[:, L:]
        wp_fused = tfwp @ wp_exp                                     # (L, 2PL)
        b_fused = tfwp @ p_b + tf_b                                  # (L,)
    else:
        wp_fused = wp_exp
        b_fused = p_b

    wp_fused = wp_fused.astype(mxu_dtype)
    b_fused = b_fused.reshape(L, 1).astype(jnp.float32)

    # ---- free leading-dim collapse (no transpose); pad lanes & batch -------
    Np = _round_up(N, 128)
    if b_tile is None:
        # keep >= 2 grid steps when possible (v7x has 2 TCs), cap tile at 8
        b_tile = max(1, min(8, pl.cdiv(bs, 2)))
    bs_p = _round_up(bs, b_tile)

    xp_flat = x_p.reshape(bs, Kp, N)
    if bs_p != bs or Np != N:
        xp_flat = jnp.pad(xp_flat, ((0, bs_p - bs), (0, 0), (0, Np - N)))

    out_specs = pl.BlockSpec((b_tile, L, Np), lambda i: (i, 0, 0))
    out_shape = jax.ShapeDtypeStruct((bs_p, L, Np), jnp.float32)
    grid = (bs_p // b_tile,)
    cparams = pltpu.CompilerParams(dimension_semantics=("parallel",))

    if use_c:
        xc_flat = x_c.reshape(bs, Kc, N)
        if bs_p != bs or Np != N:
            xc_flat = jnp.pad(xc_flat, ((0, bs_p - bs), (0, 0), (0, Np - N)))
        wc = wc_exp.astype(mxu_dtype)
        cb = c_b.reshape(L, 1).astype(jnp.float32)
        wfc = tfwc.astype(mxu_dtype)

        kernel = functools.partial(_fused_temporal_kernel,
                                   b_tile=b_tile, mxu_dtype=mxu_dtype)
        out = pl.pallas_call(
            kernel,
            out_shape=out_shape,
            grid=grid,
            in_specs=[
                pl.BlockSpec((b_tile, Kc, Np), lambda i: (i, 0, 0)),
                pl.BlockSpec((b_tile, Kp, Np), lambda i: (i, 0, 0)),
                pl.BlockSpec((L, Kc), lambda i: (0, 0)),   # Wc'   (resident)
                pl.BlockSpec((L, 1), lambda i: (0, 0)),    # c_b
                pl.BlockSpec((L, L), lambda i: (0, 0)),    # tfwc
                pl.BlockSpec((L, Kp), lambda i: (0, 0)),   # tfwp @ Wp'
                pl.BlockSpec((L, 1), lambda i: (0, 0)),    # fused bias
            ],
            out_specs=out_specs,
            compiler_params=cparams,
        )(xc_flat, xp_flat, wc, cb, wfc, wp_fused, b_fused)
    else:
        kernel = functools.partial(_period_only_kernel,
                                   b_tile=b_tile, mxu_dtype=mxu_dtype)
        out = pl.pallas_call(
            kernel,
            out_shape=out_shape,
            grid=grid,
            in_specs=[
                pl.BlockSpec((b_tile, Kp, Np), lambda i: (i, 0, 0)),
                pl.BlockSpec((L, Kp), lambda i: (0, 0)),   # Wp'
                pl.BlockSpec((L, 1), lambda i: (0, 0)),    # p_b
            ],
            out_specs=out_specs,
            compiler_params=cparams,
        )(xp_flat, wp_fused, b_fused)

    if bs_p != bs or Np != N:
        out = out[:bs, :, :N]
    return out


# ----------------------------------------------------------------------------
# Parameter construction (deterministic; PyTorch (out, in) weight layout)
# ----------------------------------------------------------------------------
def init_params(key, len_closeness: int):
    L = len_closeness
    ks = jax.random.split(key, 8)
    scale = 1.0 / jnp.sqrt(jnp.float32(2 * L))
    return {
        # Fusion.weight2 of temporal_fusion: Linear(2L -> L)
        "tf_w": jax.random.uniform(ks[0], (L, 2 * L), jnp.float32, -scale, scale),
        "tf_b": jax.random.uniform(ks[1], (L,), jnp.float32, -scale, scale),
        # Fusion.weight2 of final fusion: Linear(2L -> L)  (spatial branch only)
        "f_w": jax.random.uniform(ks[2], (L, 2 * L), jnp.float32, -scale, scale),
        "f_b": jax.random.uniform(ks[3], (L,), jnp.float32, -scale, scale),
        # placeholder per-node temporal projections (close / period stand-ins)
        "c_w": jax.random.uniform(ks[4], (L, L), jnp.float32, -scale, scale),
        "c_b": jax.random.uniform(ks[5], (L,), jnp.float32, -scale, scale),
        "p_w": jax.random.uniform(ks[6], (L, L), jnp.float32, -scale, scale),
        "p_b": jax.random.uniform(ks[7], (L,), jnp.float32, -scale, scale),
    }


# ----------------------------------------------------------------------------
# T_STGCN forward
# ----------------------------------------------------------------------------
def t_stgcn_forward(params, x_c, mode, c, s, FS, c_tgt, s_tgt, flow, x_p,
                    x_t=None, k: int = 4, mxu_dtype=jnp.bfloat16):
    bs, L, two, N = x_c.shape

    if mode not in ("cos", "corr"):
        raise Exception("wrong adj mode")

    adj = None
    index = None
    # adjacency + top_k only feed the Spatial / close submodules, whose
    # definitions are missing from the reference; skip the N*N work when no
    # spatial branch consumes it, compute it otherwise (no transpose needed:
    # node features are the columns of the collapsed (bs, 2L, N) x_c).
    if s or FS:
        feats = x_c.reshape(bs, L * two, N)
        adj = compute_adj(feats, center=(mode == "corr"))
        # torch.argsort(adj, dim=-1, descending=True)[:, :, 0:k]
        _, index = jax.lax.top_k(adj, k)

    x_spatial = None
    if s:
        # TODO(synk): `Spatial`/`gcnSpatial` definitions are not in the reference
        # source; the spatial branch is not implemented.
        pass

    # Fused temporal path (single Pallas call): flow/period means folded into
    # pre-expanded weights, the `close` placeholder (sigmoid linear), the
    # `period` placeholder (linear) and the temporal Fusion -- output already
    # in (bs, L, N) lane-dense layout.
    # TODO(synk): `close` / `period` module definitions are unavailable; they
    # are stood in by per-node linear layers over the closeness axis.
    x_temporal_t = fused_temporal(x_c, x_p, params, use_c=bool(c),
                                  mxu_dtype=mxu_dtype)            # (bs, L, N)

    if FS:
        # TODO(synk): `spatial_f` (Spatial/gcnSpatial) definition unavailable.
        pass

    # final fusion: Fusion(x_temporal, x_spatial); with the spatial branch
    # unavailable x_spatial is None -> identity.
    pred_t = x_temporal_t
    if x_spatial is not None:
        # TODO(synk): would apply params["f_w"]/["f_b"] to cat([x_temporal, x_spatial]).
        pass

    # reference returns pred.transpose(1, 2) == (bs, L, N); the fused kernel
    # already emitted that layout, so no transpose is needed here.
    return pred_t


# ----------------------------------------------------------------------------
# Pure-JAX reference of the placeholder temporal path (for validation)
# ----------------------------------------------------------------------------
def _reference_temporal(params, x_c, x_p, use_c):
    L = x_c.shape[1]
    xc_m = jnp.mean(x_c, axis=2)                        # (bs, L, N)
    xp_m = jnp.mean(x_p, axis=(1, 3))                   # (bs, L, N)
    sq_p = (jnp.einsum("ij,bjn->bin", params["p_w"], xp_m)
            + params["p_b"][None, :, None])
    if not use_c:
        return sq_p
    sq_c = jax.nn.sigmoid(jnp.einsum("ij,bjn->bin", params["c_w"], xc_m)
                          + params["c_b"][None, :, None])
    tfwp = params["tf_w"][:, :L]
    tfwc = params["tf_w"][:, L:]
    return (jnp.einsum("ij,bjn->bin", tfwp, sq_p)
            + jnp.einsum("ij,bjn->bin", tfwc, sq_c)
            + params["tf_b"][None, :, None])


# ----------------------------------------------------------------------------
if __name__ == "__main__":
    # small shapes consistent with the module's forward
    bs = 2
    len_closeness = 8
    N = 16
    flow_dims = 2
    len_period = 3
    k = 4

    key = jax.random.PRNGKey(0)
    k_xc, k_xp, k_par = jax.random.split(key, 3)

    x_c = jax.random.normal(k_xc, (bs, len_closeness, flow_dims, N), jnp.float32)
    x_p = jax.random.normal(k_xp, (bs, len_period, len_closeness, flow_dims, N),
                            jnp.float32)

    params = init_params(k_par, len_closeness)

    # exercised configuration: temporal path with closeness branch
    pred = t_stgcn_forward(
        params, x_c, mode="cos", c=True, s=False, FS=False,
        c_tgt=None, s_tgt=None, flow=0, x_p=x_p, x_t=None, k=k)
    pred = jax.block_until_ready(pred)
    assert pred.shape == (bs, len_closeness, N), pred.shape
    assert bool(jnp.all(jnp.isfinite(pred)))
    ref = _reference_temporal(params, x_c, x_p, use_c=True)
    assert bool(jnp.allclose(pred, ref, atol=5e-2, rtol=5e-2)), \
        float(jnp.max(jnp.abs(pred - ref)))

    # Fusion identity path (no closeness branch)
    pred_nc = t_stgcn_forward(
        params, x_c, mode="corr", c=False, s=False, FS=False,
        c_tgt=None, s_tgt=None, flow=0, x_p=x_p, x_t=None, k=k)
    pred_nc = jax.block_until_ready(pred_nc)
    assert pred_nc.shape == (bs, len_closeness, N)
    ref_nc = _reference_temporal(params, x_c, x_p, use_c=False)
    assert bool(jnp.allclose(pred_nc, ref_nc, atol=5e-2, rtol=5e-2))

    # exercise the batch-tiled path (b_tile > 1, incl. batch padding)
    pred_bt = jax.block_until_ready(
        fused_temporal(x_c, x_p, params, use_c=True, b_tile=8))
    assert pred_bt.shape == (bs, len_closeness, N)
    assert bool(jnp.allclose(pred_bt, ref, atol=5e-2, rtol=5e-2))

    # exercise the adjacency kernel standalone (skipped inside the forward when
    # s=FS=False because its consumers are undefined in the reference source)
    feats = x_c.reshape(bs, flow_dims * len_closeness, N)
    adj_cos = jax.block_until_ready(compute_adj(feats, center=False))
    adj_corr = jax.block_until_ready(compute_adj(feats, center=True))
    _, index = jax.lax.top_k(adj_cos, k)
    assert adj_cos.shape == (bs, N, N) and index.shape == (bs, N, k)
    assert bool(jnp.all(jnp.isfinite(adj_cos)))
    assert bool(jnp.all(jnp.isfinite(adj_corr)))
    diag = jnp.diagonal(adj_cos, axis1=1, axis2=2)
    assert bool(jnp.allclose(diag, 1.0, atol=1e-2)), diag

    print("KERNEL_OK")
</pallas_src>

<mosaic_0001>
module attributes {stable_mosaic.version = 11 : i64} {
  func.func @_fused_temporal_kernel(%arg0: i32, %arg1: memref<1x16x128xf32, #tpu.memory_space<vmem>>, %arg2: memref<1x48x128xf32, #tpu.memory_space<vmem>>, %arg3: memref<8x16xbf16, #tpu.memory_space<vmem>>, %arg4: memref<8x1xf32, #tpu.memory_space<vmem>>, %arg5: memref<8x8xbf16, #tpu.memory_space<vmem>>, %arg6: memref<8x48xbf16, #tpu.memory_space<vmem>>, %arg7: memref<8x1xf32, #tpu.memory_space<vmem>>, %arg8: memref<1x8x128xf32, #tpu.memory_space<vmem>>) attributes {dimension_semantics = [#tpu.dimension_semantics<parallel>], iteration_bounds = array<i64: 2>, scalar_prefetch = 0 : i64, scratch_operands = 0 : i64, tpu.core_type = #tpu.core_type<tc>, window_params = [{transform_indices = @transform_0, window_bounds = array<i64: 1, 16, 128>}, {transform_indices = @transform_1, window_bounds = array<i64: 1, 48, 128>}, {pipeline_mode = #tpu.pipeline_mode<synchronous>, transform_indices = @transform_2, window_bounds = array<i64: 8, 16>}, {pipeline_mode = #tpu.pipeline_mode<synchronous>, transform_indices = @transform_3, window_bounds = array<i64: 8, 1>}, {pipeline_mode = #tpu.pipeline_mode<synchronous>, transform_indices = @transform_4, window_bounds = array<i64: 8, 8>}, {pipeline_mode = #tpu.pipeline_mode<synchronous>, transform_indices = @transform_5, window_bounds = array<i64: 8, 48>}, {pipeline_mode = #tpu.pipeline_mode<synchronous>, transform_indices = @transform_6, window_bounds = array<i64: 8, 1>}, {transform_indices = @transform_7, window_bounds = array<i64: 1, 8, 128>}]} {
    %c0 = arith.constant 0 : index
    %c0_0 = arith.constant 0 : index
    %0 = vector.load %arg3[%c0, %c0_0] : memref<8x16xbf16, #tpu.memory_space<vmem>>, vector<8x16xbf16>
    %c0_1 = arith.constant 0 : index
    %c0_2 = arith.constant 0 : index
    %1 = vector.load %arg5[%c0_1, %c0_2] : memref<8x8xbf16, #tpu.memory_space<vmem>>, vector<8x8xbf16>
    %c0_3 = arith.constant 0 : index
    %c0_4 = arith.constant 0 : index
    %2 = vector.load %arg6[%c0_3, %c0_4] : memref<8x48xbf16, #tpu.memory_space<vmem>>, vector<8x48xbf16>
    %c0_5 = arith.constant 0 : index
    %c0_6 = arith.constant 0 : index
    %3 = vector.load %arg4[%c0_5, %c0_6] : memref<8x1xf32, #tpu.memory_space<vmem>>, vector<8x1xf32>
    %c0_7 = arith.constant 0 : index
    %c0_8 = arith.constant 0 : index
    %4 = vector.load %arg7[%c0_7, %c0_8] : memref<8x1xf32, #tpu.memory_space<vmem>>, vector<8x1xf32>
    %c0_9 = arith.constant 0 : index
    %c0_10 = arith.constant 0 : index
    %c0_11 = arith.constant 0 : index
    %5 = vector.load %arg2[%c0_9, %c0_10, %c0_11] : memref<1x48x128xf32, #tpu.memory_space<vmem>>, vector<1x48x128xf32>
    %6 = vector.shape_cast %5 : vector<1x48x128xf32> to vector<48x128xf32>
    %7 = arith.truncf %6 : vector<48x128xf32> to vector<48x128xbf16>
    %c0_12 = arith.constant 0 : index
    %c0_13 = arith.constant 0 : index
    %c0_14 = arith.constant 0 : index
    %8 = vector.load %arg1[%c0_12, %c0_13, %c0_14] : memref<1x16x128xf32, #tpu.memory_space<vmem>>, vector<1x16x128xf32>
    %9 = vector.shape_cast %8 : vector<1x16x128xf32> to vector<16x128xf32>
    %10 = arith.truncf %9 : vector<16x128xf32> to vector<16x128xbf16>
    %cst = arith.constant dense<0.000000e+00> : vector<8x128xf32>
    %11 = tpu.matmul %2, %7, %cst {dimension_numbers = #tpu.dot_dimension_numbers<[1], [0], [0], [1], [0, 0, 1, 1], [], []>} : vector<8x48xbf16>, vector<48x128xbf16>, vector<8x128xf32> -> vector<8x128xf32>
    %cst_15 = arith.constant dense<0.000000e+00> : vector<8x128xf32>
    %12 = tpu.matmul %0, %10, %cst_15 {dimension_numbers = #tpu.dot_dimension_numbers<[1], [0], [0], [1], [0, 0, 1, 1], [], []>} : vector<8x16xbf16>, vector<16x128xbf16>, vector<8x128xf32> -> vector<8x128xf32>
    %13 = vector.broadcast %3 : vector<8x1xf32> to vector<8x128xf32>
    %14 = arith.addf %12, %13 : vector<8x128xf32>
    %15 = arith.negf %14 : vector<8x128xf32>
    %16 = math.exp %15 : vector<8x128xf32>
    %cst_16 = arith.constant 1.000000e+00 : f32
    %17 = vector.broadcast %cst_16 : f32 to vector<8x128xf32>
    %18 = arith.addf %17, %16 : vector<8x128xf32>
    %19 = arith.divf %17, %18 : vector<8x128xf32>
    %20 = arith.truncf %19 : vector<8x128xf32> to vector<8x128xbf16>
    %cst_17 = arith.constant dense<0.000000e+00> : vector<8x128xf32>
    %21 = tpu.matmul %1, %20, %cst_17 {dimension_numbers = #tpu.dot_dimension_numbers<[1], [0], [0], [1], [0, 0, 1, 1], [], []>} : vector<8x8xbf16>, vector<8x128xbf16>, vector<8x128xf32> -> vector<8x128xf32>
    %22 = arith.addf %11, %21 : vector<8x128xf32>
    %23 = vector.broadcast %4 : vector<8x1xf32> to vector<8x128xf32>
    %24 = arith.addf %22, %23 : vector<8x128xf32>
    %c0_18 = arith.constant 0 : index
    %c0_19 = arith.constant 0 : index
    %c0_20 = arith.constant 0 : index
    %25 = vector.load %arg8[%c0_18, %c0_19, %c0_20] : memref<1x8x128xf32, #tpu.memory_space<vmem>>, vector<1x8x128xf32>
    %26 = vector.shape_cast %25 : vector<1x8x128xf32> to vector<8x128xf32>
    %27 = vector.shape_cast %24 : vector<8x128xf32> to vector<1x8x128xf32>
    tpu.vector_store %arg8[%c0_18, %c0_19, %c0_20], %27 {strides = array<i32>} : memref<1x8x128xf32, #tpu.memory_space<vmem>>, vector<1x8x128xf32>,
    return
  }
  func.func @transform_0(%arg0: i32) -> (i32, i32, i32) {
    %c0_i32 = arith.constant 0 : i32
    %c0_i32_0 = arith.constant 0 : i32
    %c0_i32_1 = arith.constant 0 : i32
    return %arg0, %c0_i32, %c0_i32_0 : i32, i32, i32
  }
  func.func @transform_1(%arg0: i32) -> (i32, i32, i32) {
    %c0_i32 = arith.constant 0 : i32
    %c0_i32_0 = arith.constant 0 : i32
    %c0_i32_1 = arith.constant 0 : i32
    return %arg0, %c0_i32, %c0_i32_0 : i32, i32, i32
  }
  func.func @transform_2(%arg0: i32) -> (i32, i32) {
    %c0_i32 = arith.constant 0 : i32
    %c0_i32_0 = arith.constant 0 : i32
    %c0_i32_1 = arith.constant 0 : i32
    return %c0_i32, %c0_i32_0 : i32, i32
  }
  func.func @transform_3(%arg0: i32) -> (i32, i32) {
    %c0_i32 = arith.constant 0 : i32
    %c0_i32_0 = arith.constant 0 : i32
    %c0_i32_1 = arith.constant 0 : i32
    return %c0_i32, %c0_i32_0 : i32, i32
  }
  func.func @transform_4(%arg0: i32) -> (i32, i32) {
    %c0_i32 = arith.constant 0 : i32
    %c0_i32_0 = arith.constant 0 : i32
    %c0_i32_1 = arith.constant 0 : i32
    return %c0_i32, %c0_i32_0 : i32, i32
  }
  func.func @transform_5(%arg0: i32) -> (i32, i32) {
    %c0_i32 = arith.constant 0 : i32
    %c0_i32_0 = arith.constant 0 : i32
    %c0_i32_1 = arith.constant 0 : i32
    return %c0_i32, %c0_i32_0 : i32, i32
  }
  func.func @transform_6(%arg0: i32) -> (i32, i32) {
    %c0_i32 = arith.constant 0 : i32
    %c0_i32_0 = arith.constant 0 : i32
    %c0_i32_1 = arith.constant 0 : i32
    return %c0_i32, %c0_i32_0 : i32, i32
  }
  func.func @transform_7(%arg0: i32) -> (i32, i32, i32) {
    %c0_i32 = arith.constant 0 : i32
    %c0_i32_0 = arith.constant 0 : i32
    %c0_i32_1 = arith.constant 0 : i32
    return %arg0, %c0_i32, %c0_i32_0 : i32, i32, i32
  }
}

</mosaic_0001>

<bundles_post_ra>
// kernel: tpu_custom_call.1
= control target key start
LH: loop header
LB: loop body
LE: loop exit
PB: predicated region body
PF: predicated region fallthrough
CT: control target
= control target key end

     0   :  { %s1153_s0 = inlined_call_operand.hbm [shape: f32[2,16,128], index: 0, kind: input, shape index: {}]   ;;  %s1154_s1 = inlined_call_operand.hbm [shape: f32[2,48,128], index: 1, kind: input, shape index: {}]   ;;  %s1155_s2 = inlined_call_operand.vmem [shape: bf16[8,16], index: 2, kind: input, shape index: {}]   ;;  %s1156_s3 = inlined_call_operand.vmem [shape: f32[8,1], index: 3, kind: input, shape index: {}]   ;;  %s1157_s4 = inlined_call_operand.vmem [shape: bf16[8,8], index: 4, kind: input, shape index: {}]   ;;  %s1158_s5 = inlined_call_operand.vmem [shape: bf16[8,48], index: 5, kind: input, shape index: {}]   ;;  %s1159_s6 = inlined_call_operand.vmem [shape: f32[8,1], index: 6, kind: input, shape index: {}]   ;;  %s1160_s7 = inlined_call_operand.hbm [shape: f32[2,8,128], index: 7, kind: output, shape index: {}]  }
   0x1   :  { %1164 = sst [smem:[#allocation12_spill]] %s1153_s0 }
   0x2   :  { %12 = vsyncpa [#allocation3], 0 }
   0x3   :  { %14 = vsyncpa [#allocation3 + $0x1], 0 }
   0x4   :  { %15 = vsyncpa [#allocation6], 0 }
   0x5   :  { %17 = vsyncpa [#allocation6 + $0x1], 0 }
   0x6   :  { %18 = vsyncpa [#allocation4], 0 }
   0x7   :  { %20 = vsyncpa [#allocation4 + $0x1], 0  ;;  %s910_s24 = smov 0   ;;  %s912_s25 = smov 0  }
   0x8   :  { %s914_s26 = smov 0   ;;  %s916_s27 = smov 0  }
   0x9 LB: > { %s931_s28 = sadd.s32 4294967295, %s860_s27   ;;  %s617_s29 = sadd.s32 4294967294, %s860_s27   ;;  %s860_s27 = sphi %s916_s27, %s1182_s27   ;;  %s856_s26 = sphi %s914_s26, %s1181_s26   ;;  %s852_s25 = sphi %s912_s25, %s1180_s25   ;;  %s848_s24 = sphi %s910_s24, %s1179_s24  }
   0xa   : > { %s935_s30 = sadd.s32 1, %s860_s27   ;;  %s33_s8 = sadd.s32 1, %s856_s26 }
   0xb   : > { %s30_s9 = ssub.s32 %s860_s27, %s935_s30  ;;  %p40_p0 = scmp.ne.s32.totalorder %s856_s26, %s852_s25 }
   0xc   : > { %p31_p1 = scmp.eq.s32.totalorder %s30_s9, 0  ;;  %p41_p2 = scmp.eq.s32.totalorder %s860_s27, 0 }
   0xd   : > { %p46_p3 = scmp.ne.s32.totalorder %s852_s25, %s848_s24  ;;  %p47_p4 = scmp.eq.s32.totalorder %s931_s28, 0 }
   0xe   : > { %s947_s10 = scalar_select %p31_p1, %s856_s26, %s33_s8  }
   0xf   : > { %p949_p5 = por %p41_p2, %p40_p0  ;;  %p953_p6 = por %p47_p4, %p46_p3 }
  0x10   : > { %1165 = sst [smem:[#allocation11_spill]] %s947_s10  ;;  %p201_p7 = scmp.eq.s32.totalorder %s931_s28, 1 }
  0x11   : > { %s1167_s12 = scalar_select %p953_p6, 1, 0 }
  0x12   : > { %p207_p8 = scmp.eq.s32.totalorder %s617_s29, 1  ;;  %p686_p10 = scmp.lt.s32.totalorder %s860_s27, 2 }
  0x13   : > { %p960_p11 = por %p201_p7, %p40_p0  ;;  %s969_s15 = sand.u32 1, %s856_s26  }
  0x14   : > { %p964_p12 = por %p207_p8, %p46_p3  ;;  %s635_s16 = sshll.u32 %s860_s27, 8 }
  0x15   : > { %s1168_s13 = scalar_select %p960_p11, 1, 0 }
  0x16   : > { %s1169_s14 = scalar_select %p964_p12, 1, 0 }
  0x17   : > { %s620_s17 = sshll.u32 %s969_s15, 4  ;;  %s1170_s0 = sld [smem:[#allocation12_spill]] }
  0x18   : > { %s246_s21 = scalar_lea.vmem [#allocation2], %s620_s17  ;;  %p980_p13 = pnand %p686_p10, %p949_p5 }
  0x19   : > { %s253_s22 = sshll.u32 %s246_s21, 4  ;;  %s243_s29 = scalar_lea.sflag [#allocation3], %s969_s15  ;;  %s984_s22 = int_to_ptr.vmem [resolvable:$true] %s253_s22 }
  0x1a   : > { %p732_p1 = pneg %p980_p13 }
  0x1d   : > { %s976_s20 = scalar_lea.hbm %s1170_s0, %s635_s16  ;;  %s735_s11 = scalar_lea.hbm %s1170_s0, 512 }
  0x1e   : > { %s730_s8 = scalar_lea.hbm %s976_s20, 256  ;;  %p736_p4 = scmp.lt.u32.totalorder %s976_s20, %s1170_s0 }
  0x1f   : > { %p731_p0 = scmp.ne.s32.totalorder %s976_s20, %s730_s8  ;;  %p737_p5 = scmp.lt.u32.totalorder %s735_s11, %s730_s8 }
  0x20   : > { %p739_p8 = scmp.lt.u32.totalorder %s730_s8, %s976_s20 }
  0x21   : > { %p733_p2 = pnand %p732_p1, %p731_p0  ;;  %p738_p7 = por %p737_p5, %p736_p4 }
  0x23   : > { %p734_p3 = pneg %p733_p2  ;;  %p740_p10 = por %p739_p8, %p738_p7 }
  0x25   : > { %p741_p9 = pnand %p740_p10, %p734_p3 }
  0x27   : > { %744 = shalt.err (!%p741_p9)
}
  0x28   : > { %s745_s19 = scalar_lea.vmem %s984_s22, 256  ;;  %s862_s21 = smov [#allocation2]  }
  0x29   : > { %p746_p0 = scmp.ne.s32.totalorder %s984_s22, %s745_s19  ;;  %s750_s9 = sshll.u32 %s862_s21, 4  ;;  %s751_s9 = int_to_ptr.vmem [resolvable:$false] %s750_s9 }
  0x2a   : > { %s752_s16 = scalar_lea.vmem %s751_s9, 512  ;;  %p753_p11 = scmp.lt.s32.totalorder %s984_s22, %s751_s9 }
  0x2b   : > { %p748_p2 = pnand %p746_p0, %p732_p1  ;;  %p754_p4 = scmp.lt.s32.totalorder %s752_s16, %s745_s19 }
  0x2d   : > { %p749_p12 = pneg %p748_p2  ;;  %p755_p5 = por %p754_p4, %p753_p11 }
  0x2f   : > { %p756_p7 = pnand %p755_p5, %p749_p12 }
  0x31   : > { %759 = shalt.err (!%p756_p7)
}
  0x32   : > { %s1162_s8 = smov 128   ;;  %s864_s11 = smov 8  }
  0x33   : > { %678 = dma.hbm_to_vmem [thread:$0]  (!%p980_p13), %s976_s20, 256, %s984_s22, %s243_s29, %s1162_s8, %s1162_s8, %s864_s11  }
  0x34   : > { %p624_p9 = scmp.ge.s32.totalorder %s860_s27, 1  ;;  %p282_p11 = scmp.lt.s32.totalorder %s860_s27, 3 }
  0x35   : > { %s666_s17 = smul.u32 48, %s969_s15  ;;  %s264_s20 = scalar_lea.sflag [#allocation6], %s969_s15 }
  0x36   : > { %p1020_p12 = pnand %p624_p9, %p282_p11  ;;  %s667_s19 = smul.u32 768, %s860_s27 }
  0x37   : > { %s267_s0 = scalar_lea.vmem [#allocation5], %s666_s17 }
  0x38   : > { %s1028_s16 = scalar_lea.hbm %s1154_s1, %s667_s19  ;;  %s274_s10 = sshll.u32 %s267_s0, 4  ;;  %s1030_s10 = int_to_ptr.vmem [resolvable:$true] %s274_s10 }
  0x39   : > { %s760_s22 = scalar_lea.hbm %s1028_s16, 768  ;;  %s765_s19 = scalar_lea.hbm %s1154_s1, 1536 }
  0x3a   : > { %p761_p3 = scmp.ne.s32.totalorder %s1028_s16, %s760_s22  ;;  %p766_p0 = scmp.lt.u32.totalorder %s1028_s16, %s1154_s1 }
  0x3b   : > { %p767_p2 = scmp.lt.u32.totalorder %s765_s19, %s760_s22  ;;  %p769_p5 = scmp.lt.u32.totalorder %s760_s22, %s1028_s16 }
  0x3c   : > { %p763_p8 = pnand %p761_p3, %p732_p1 }
  0x3d   : > { %p768_p4 = por %p767_p2, %p766_p0 }
  0x3e   : > { %p764_p10 = pneg %p763_p8 }
  0x3f   : > { %p770_p7 = por %p769_p5, %p768_p4 }
  0x41   : > { %p771_p9 = pnand %p770_p7, %p764_p10 }
  0x43   : > { %774 = shalt.err (!%p771_p9)
}
  0x44   : > { %s775_s0 = scalar_lea.vmem %s1030_s10, 768  ;;  %s865_s8 = smov [#allocation5]  }
  0x45   : > { %p776_p11 = scmp.ne.s32.totalorder %s1030_s10, %s775_s0  ;;  %s780_s17 = sshll.u32 %s865_s8, 4  ;;  %s781_s17 = int_to_ptr.vmem [resolvable:$false] %s780_s17 }
  0x46   : > { %s782_s29 = scalar_lea.vmem %s781_s17, 1536  ;;  %p783_p6 = scmp.lt.s32.totalorder %s1030_s10, %s781_s17 }
  0x47   : > { %p778_p3 = pnand %p776_p11, %p732_p1  ;;  %p784_p0 = scmp.lt.s32.totalorder %s782_s29, %s775_s0 }
  0x49   : > { %p779_p8 = pneg %p778_p3  ;;  %p785_p2 = por %p784_p0, %p783_p6 }
  0x4b   : > { %p786_p4 = pnand %p785_p2, %p779_p8 }
  0x4d   : > { %789 = shalt.err (!%p786_p4)
}
  0x4e   : > { %s1173_s22 = smov 128   ;;  %286 = sbr.rel (%p1020_p12) target bundleno = 573 (0x23d), region = 48 }
  0x4f   : > { %681 = dma.hbm_to_vmem [thread:$0]  (!%p980_p13), %s1028_s16, 768, %s1030_s10, %s264_s20, %s1173_s22, %s1173_s22, %s864_s11  }
  0x50   : > { %s1064_s19 = sand.u32 (!%p1020_p12), 1, %s852_s25   ;;  %p1174_p6 = scmp.ne.s32.totalorder (!%p1020_p12), %s1167_s12, 0 }
  0x51   : > { %s625_s21 = sshll.u32 (!%p1020_p12), %s1064_s19, 4  ;;  %s289_s9 = scalar_lea.sflag (!%p1020_p12), [#allocation3], %s1064_s19 }
  0x52   : > { %s292_s23 = scalar_lea.vmem (!%p1020_p12), [#allocation2], %s625_s21 }
  0x55   : > { %835 = dma.done.wait (%p1174_p6), %s289_s9, 256  }
  0x56   : > { %837 = vsyncadd (%p1174_p6), %s289_s9, 4294967040  ;;  %s668_s10 = smul.u32 48, %s1064_s19  ;;  %s298_s15 = scalar_lea.sflag [#allocation6], %s1064_s19 }
  0x58   : > { %s1074_s11 = scalar_lea.vmem [#allocation5], %s668_s10 }
  0x59   : > { %839 = dma.done.wait (%p1174_p6), %s298_s15, 768  }
  0x5a   : > { %841 = vsyncadd (%p1174_p6), %s298_s15, 4294966528  ;;  %v866_v0 = vmov 0.0   ;;  %vm867_vm0 = vmmov 0   ;;  %v868_v1 = vmov 0   ;;  %v352_v2 = vld [vmem:[%s292_s23] sm:$0xff]  ;;  %v353_v3 = vld [vmem:[%s292_s23 + $0x8] sm:$0xff] }
  0x5b   : > { %644 = vmatprep.subr.bf16.mxu1 %v866_v0  ;;  %646 = vmatprep.mubr.msk.bf16.mxu1 %vm867_vm0, %v866_v0  ;;  %v354_v4 = vpack.c.bf16 %v353_v3, %v352_v2  ;;  %v341_v5 = vld [vmem:[%s1156_s3] sm:$0xff]  ;;  %vm360_vm1 = vcmask 130048   ;;  %v344_v9 = vld [vmem:[%s1074_s11 + $0x8] sm:$0xff]  ;;  %v346_v12 = vld [vmem:[%s1074_s11 + $0x18] sm:$0xff]  ;;  %vm459_vm2 = vcmask 392192   ;;  %vm415_vm3 = vcmask 1043456  }
  0x5c   : > { %725 = vset.pattern.permute.xlu0 %v868_v1  ;;  %656 = vmatprep.subr.bf16.mxu0 %v866_v0  ;;  %v338_v6 = vld [vmem:[%s1155_s2] sm:$0xf]  ;;  %v348_v15 = vld [vmem:[%s1074_s11 + $0x28] sm:$0xff]  ;;  %vm411_vm4 = vcmask 64512   ;;  %s626_s9 = sshll.u32 %s1064_s19, 3  ;;  %s632_s23 = sshll.u32 %s931_s28, 7 }
  0x5d   : > { %662 = vmatprep.mubr.msk.bf16.mxu0 %vm867_vm0, %v866_v0  ;;  %357 = vperm.xlu0 %725, %v341_v5   ;;  %v342_v7 = vld [vmem:[%s1159_s6] sm:$0xff]  ;;  %s336_s10 = scalar_lea.vmem [#allocation7], %s626_s9  ;;  %s1109_s12 = scalar_lea.hbm %s1160_s7, %s632_s23 }
  0x5e   : > { %645 = vmatpush3.bf16.msra.mxu1 %v354_v4  ;;  %v343_v8 = vld [vmem:[%s1074_s11] sm:$0xff]  ;;  %v345_v10 = vld [vmem:[%s1074_s11 + $0x10] sm:$0xff]  ;;  %s524_s15 = sshll.u32 %s336_s10, 4  ;;  %s511_s28 = scalar_lea.sflag [#allocation4], %s1064_s19  ;;  %s1111_s15 = int_to_ptr.vmem [resolvable:$true] %s524_s15 }
  0x5f   : > { %650 = vmatprep.subr.bf16.mxu1 %v866_v0  ;;  %v349_v11 = vpack.c.bf16 %v344_v9, %v343_v8  ;;  %v350_v13 = vpack.c.bf16 %v346_v12, %v345_v10  ;;  %v347_v14 = vld [vmem:[%s1074_s11 + $0x20] sm:$0xff]  ;;  %s790_s16 = scalar_lea.vmem %s1111_s15, 128  ;;  %p1175_p1 = scmp.ne.s32.totalorder %s1168_s13, 0 }
  0x60   : > { %v351_v16 = vpack.c.bf16 %v348_v15, %v347_v14  ;;  %v340_v17 = vld [vmem:[%s1158_s5] sm:$0xf]  ;;  %p791_p13 = scmp.ne.s32.totalorder %s1111_s15, %s790_s16  ;;  %s869_s20 = smov [#allocation7]  }
  0x61   : > { %647 = vmatmul.mubr.msk.bf16.vlgmr.msra.gmra.mrb[0].mxu1 %vm360_vm1, %v338_v6  ;;  %505 = vperm.xlu0 %725, %v342_v7   ;;  %v339_v30 = vld [vmem:[%s1157_s4] sm:$0xf]  ;;  %s794_s0 = sshll.u32 %s869_s20, 4  ;;  %s795_s0 = int_to_ptr.vmem [resolvable:$false] %s794_s0 }
  0x62   : > { %652 = vmatprep.mubr.msk.bf16.mxu1 %vm867_vm0, %v866_v0  ;;  %657 = vmatpush3.bf16.msra.mxu0 %v349_v11  ;;  %p792_p12 = pnand %p791_p13, %p1175_p1  ;;  %s796_s8 = scalar_lea.vmem %s795_s0, 256 }
  0x63   : > { %658 = vmatprep.subr.bf16.mxu0 %v866_v0  ;;  %p797_p5 = scmp.lt.s32.totalorder %s1111_s15, %s795_s0  ;;  %p798_p7 = scmp.lt.s32.totalorder %s796_s8, %s790_s16 }
  0x64   : > { %p793_p10 = pneg %p792_p12 }
  0x65   : > { %p799_p9 = por %p798_p7, %p797_p5 }
  0x66   : > { %659 = vmatpush3.bf16.msra.mxu0 %v350_v13 }
  0x67   : > { %660 = vmatprep.subr.bf16.mxu0 %v866_v0  ;;  %p800_p11 = pnand %p799_p9, %p793_p10 }
  0x6a   : > { %661 = vmatpush3.bf16.msra.mxu0 %v351_v16 }
  0x6d   : > { %663 = vmatmul.mubr.msk.bf16.vlgmr.msra.gmra.mrb[0].mxu0 %vm459_vm2, %v340_v17 }
  0xdc   : > { %v358_v18 = vpop.permute.xlu0 %357 }
  0xe0   : > { %v506_v38 = vpop.permute.xlu0 %505 }
 0x134   : > { %v398_v19 = vpop.f32.mrb[0].mxu1 }
 0x135   : > { %v399_v20 = vadd.f32 %v398_v19, %v358_v18  ;;  %v648_v21 = vpop.f32.mrb[1].mxu1 }
 0x136   : > { %v401_v22 = vpop.f32.mrb[2].mxu1 }
 0x137   : > { %v628_v23 = vmul.f32 -1.442695, %v399_v20  ;;  %v649_v24 = vpop.f32.mrb[3].mxu1 }
 0x139   : > { %726 = vpow2.f32 %v628_v23 }
 0x140   : > { %v497_v31 = vpop.f32.mrb[0].mxu0 }
 0x141   : > { %v664_v32 = vpop.f32.mrb[1].mxu0 }
 0x142   : > { %v500_v33 = vpop.f32.mrb[2].mxu0 }
 0x143   : > { %v727_v25 = vpop.eup %726  ;;  %v665_v34 = vpop.f32.mrb[3].mxu0 }
 0x144   : > { %v407_v26 = vadd.f32 1.0, %v727_v25 }
 0x146   : > { %728 = vrcp.f32 %v407_v26 }
 0x150   : > { %v729_v27 = vpop.eup %728 }
 0x151   : > { %v410_v28 = vpack.c.bf16 %v729_v27, %v729_v27 }
 0x153   : > { %v417_v29 = vsel %vm415_vm3, %v410_v28, 0 }
 0x154   : > { %651 = vmatpush3.bf16.msra.mxu1 %v417_v29 }
 0x157   : > { %653 = vmatmul.mubr.msk.bf16.vlgmr.msra.gmra.mrb[4].mxu1 %vm411_vm4, %v339_v30 }
 0x22a   : > { %v453_v35 = vpop.f32.mrb[4].mxu1 }
 0x22b   : > { %v498_v36 = vadd.f32 %v497_v31, %v453_v35  ;;  %v654_v37 = vpop.f32.mrb[5].mxu1 }
 0x22c   : > { %v456_v39 = vpop.f32.mrb[6].mxu1 }
 0x22d   : > { %v508_v40 = vadd.f32 %v506_v38, %v498_v36  ;;  %v655_v41 = vpop.f32.mrb[7].mxu1 }
 0x22f   : > { %509 = vst [vmem:[%s336_s10] sm:$0xff] %v508_v40 }
 0x230   : > { %803 = shalt.err (!%p800_p11)
}
 0x231   : > { %s804_s19 = scalar_lea.hbm %s1109_s12, 128  ;;  %s808_s22 = scalar_lea.hbm %s1160_s7, 256 }
 0x232   : > { %p805_p3 = scmp.ne.s32.totalorder %s1109_s12, %s804_s19  ;;  %p809_p2 = scmp.lt.u32.totalorder %s1109_s12, %s1160_s7 }
 0x233   : > { %p810_p4 = scmp.lt.u32.totalorder %s808_s22, %s804_s19  ;;  %p812_p13 = scmp.lt.u32.totalorder %s804_s19, %s1109_s12 }
 0x234   : > { %p806_p8 = pnand %p805_p3, %p1175_p1 }
 0x235   : > { %p811_p6 = por %p810_p4, %p809_p2 }
 0x236   : > { %p807_p0 = pneg %p806_p8 }
 0x237   : > { %p813_p12 = por %p812_p13, %p811_p6 }
 0x239   : > { %p814_p10 = pnand %p813_p12, %p807_p0 }
 0x23b   : > { %817 = shalt.err (!%p814_p10)
}
 0x23c   : > { %673 = dma.vmem_to_hbm [thread:$0]  (%p1175_p1), %s1111_s15, 128, %s1109_s12, %s511_s28  }
 0x23d PF: > { %s536_s23 = sand.u32 1, %s848_s24   ;;  %p1176_p5 = scmp.ne.s32.totalorder %s1169_s14, 0 }
 0x23e   : > { %p1177_p7 = scmp.ge.s32.totalorder %s860_s27, 2  ;;  %s537_s10 = scalar_lea.sflag [#allocation4], %s536_s23 }
 0x240   : > { %p683_p9 = pnand %p1177_p7, %p1176_p5 }
 0x242   : > { %843 = dma.done.wait (!%p683_p9), %s537_s10, 128  }
 0x243   : > { %845 = vsyncadd (!%p683_p9), %s537_s10, 4294967168  ;;  %s1178_s11 = sld [smem:[#allocation11_spill]]  ;;  %p23_p11 = scmp.ge.s32.totalorder %s935_s30, 4  }
 0x244   : > { %s1179_s24 = smov %s852_s25  ;;  %s1180_s25 = smov %s856_s26 }
 0x245   : > { %s1182_s27 = smov %s935_s30  ;;  %25 = sbr.rel (!%p23_p11) target bundleno = 9 (0x9), region = 106 }
 0x249   : > { %s1181_s26 = smov %s1178_s11 }
 0x24c   :  { %542 = vsyncpa [#allocation3], 1 }
 0x24d   :  { %544 = vsyncpa [#allocation3 + $0x1], 1 }
 0x24e   :  { %545 = vsyncpa [#allocation6], 1 }
 0x24f   :  { %547 = vsyncpa [#allocation6 + $0x1], 1 }
 0x250   :  { %548 = vsyncpa [#allocation4], 1 }
 0x251   :  { %550 = vsyncpa [#allocation4 + $0x1], 1 }

</bundles_post_ra>
